<compile_context>
chip_gen: v5e
topology: v5e:2x2
jax: 0.10.0
libtpu: 0.0.40
codegen_flags: <defaults>
</compile_context>

<pallas_src>
import jax
import jax.numpy as jnp
from jax.experimental import pallas as pl
from jax.experimental.pallas import tpu as pltpu

NUM_CLASSES = 12
H, W = 13, 7
HALF_IN = H * W                       # 91  (one of x / cond, flattened)
IN_FEATURES = 2 * HALF_IN             # 182
HIDDEN = 128
OUT_FEATURES = H * W * NUM_CLASSES    # 1092

# Lane-dense padded sizes (multiples of 128 on the lane axis).
HALF_IN_PAD = 128                     # 91  -> 128
OUT_PAD = 1152                        # 1092 -> 9 * 128


def _round_up(n, m):
    return (n + m - 1) // m * m


def _generator_kernel(x_ref, c_ref, w1x_ref, w1c_ref, b1_ref, w2_ref, b2_ref,
                      o_ref):
    # Fused concat: h = x @ W1[:91] + cond @ W1[91:] + b1 (halves K-padded to 128).
    h = jnp.dot(x_ref[...], w1x_ref[...], preferred_element_type=jnp.float32)
    h = h + jnp.dot(c_ref[...], w1c_ref[...], preferred_element_type=jnp.float32)
    h = jnp.maximum(h + b1_ref[...], 0.0)                 # f32 epilogue
    y = jnp.dot(h.astype(jnp.bfloat16), w2_ref[...],
                preferred_element_type=jnp.float32)
    o_ref[...] = (y + b2_ref[...]).astype(o_ref.dtype)


def init_params(key):
    """Synthetic init; weights stored as (in, out), f32 (PyTorch shapes^T)."""
    k1, k2, k3, k4 = jax.random.split(key, 4)
    w1 = jax.random.uniform(k1, (IN_FEATURES, HIDDEN), jnp.float32,
                            minval=-1.0, maxval=1.0) / jnp.sqrt(IN_FEATURES)
    b1 = jax.random.uniform(k2, (1, HIDDEN), jnp.float32,
                            minval=-1.0, maxval=1.0) / jnp.sqrt(IN_FEATURES)
    w2 = jax.random.uniform(k3, (HIDDEN, OUT_FEATURES), jnp.float32,
                            minval=-1.0, maxval=1.0) / jnp.sqrt(HIDDEN)
    b2 = jax.random.uniform(k4, (1, OUT_FEATURES), jnp.float32,
                            minval=-1.0, maxval=1.0) / jnp.sqrt(HIDDEN)
    return w1, b1, w2, b2


def prepare_params(w1, b1, w2, b2):
    """One-time: split W1 at the x/cond boundary, zero-pad to lane-dense
    shapes, cast weights to bf16 (biases stay f32 for the f32 epilogue)."""
    w1x = jnp.zeros((HALF_IN_PAD, HIDDEN), jnp.float32)
    w1x = w1x.at[:HALF_IN].set(w1[:HALF_IN])
    w1c = jnp.zeros((HALF_IN_PAD, HIDDEN), jnp.float32)
    w1c = w1c.at[:HALF_IN].set(w1[HALF_IN:])
    w2p = jnp.zeros((HIDDEN, OUT_PAD), jnp.float32)
    w2p = w2p.at[:, :OUT_FEATURES].set(w2)
    b2p = jnp.zeros((1, OUT_PAD), jnp.float32)
    b2p = b2p.at[:, :OUT_FEATURES].set(b2.reshape(1, OUT_FEATURES))
    return (w1x.astype(jnp.bfloat16), w1c.astype(jnp.bfloat16),
            b1.reshape(1, HIDDEN).astype(jnp.float32),
            w2p.astype(jnp.bfloat16), b2p)


def generator_forward(x, cond, params):
    """x, cond: (B, 1, 13, 7) float32 (NCHW). Returns (B, 12, 13, 7) f32."""
    w1x, w1c, b1, w2p, b2p = params
    B = x.shape[0]

    # Flatten each NCHW half row-major (matches torch .view); no concat needed.
    xf = x.reshape(B, HALF_IN).astype(jnp.bfloat16)
    cf = cond.reshape(B, HALF_IN).astype(jnp.bfloat16)

    # Batch tiling: TM rows per grid step (TM multiple of 8 sublanes).
    TM = 256 if B >= 256 else _round_up(max(B, 1), 8)
    B_pad = _round_up(B, TM)
    xf = jnp.pad(xf, ((0, B_pad - B), (0, HALF_IN_PAD - HALF_IN)))
    cf = jnp.pad(cf, ((0, B_pad - B), (0, HALF_IN_PAD - HALF_IN)))

    out = pl.pallas_call(
        _generator_kernel,
        out_shape=jax.ShapeDtypeStruct((B_pad, OUT_PAD), jnp.float32),
        grid_spec=pltpu.PrefetchScalarGridSpec(
            num_scalar_prefetch=0,
            grid=(B_pad // TM,),
            in_specs=[
                pl.BlockSpec((TM, HALF_IN_PAD), lambda i: (i, 0)),      # x
                pl.BlockSpec((TM, HALF_IN_PAD), lambda i: (i, 0)),      # cond
                pl.BlockSpec((HALF_IN_PAD, HIDDEN), lambda i: (0, 0)),  # w1 (x half)
                pl.BlockSpec((HALF_IN_PAD, HIDDEN), lambda i: (0, 0)),  # w1 (cond half)
                pl.BlockSpec((1, HIDDEN), lambda i: (0, 0)),            # b1
                pl.BlockSpec((HIDDEN, OUT_PAD), lambda i: (0, 0)),      # w2
                pl.BlockSpec((1, OUT_PAD), lambda i: (0, 0)),           # b2
            ],
            out_specs=pl.BlockSpec((TM, OUT_PAD), lambda i: (i, 0)),
        ),
        compiler_params=pltpu.CompilerParams(
            # M tiles are independent -> shard across TCs (v7x megacore).
            dimension_semantics=("parallel",)),
    )(xf, cf, w1x, w1c, b1, w2p, b2p)

    return out[:B, :OUT_FEATURES].reshape(B, NUM_CLASSES, H, W)


if __name__ == "__main__":
    key = jax.random.PRNGKey(0)
    kx, kc, kp = jax.random.split(key, 3)

    B = 2
    x = jax.random.normal(kx, (B, 1, H, W), jnp.float32)      # NCHW
    cond = jax.random.normal(kc, (B, 1, H, W), jnp.float32)   # NCHW

    w1, b1, w2, b2 = init_params(kp)
    params = prepare_params(w1, b1, w2, b2)

    out = jax.block_until_ready(generator_forward(x, cond, params))
    assert out.shape == (B, NUM_CLASSES, H, W)

    # Reference 1: same bf16-quantized weights / f32 accumulation (tight check).
    w1x, w1c, b1p, w2p, b2p = params
    xf = x.reshape(B, HALF_IN).astype(jnp.bfloat16)
    cf = cond.reshape(B, HALF_IN).astype(jnp.bfloat16)
    h = (jnp.dot(xf, w1x[:HALF_IN], preferred_element_type=jnp.float32)
         + jnp.dot(cf, w1c[:HALF_IN], preferred_element_type=jnp.float32)
         + b1p)
    h = jnp.maximum(h, 0.0)
    y = jnp.dot(h.astype(jnp.bfloat16), w2p,
                preferred_element_type=jnp.float32) + b2p
    ref_bf16 = y[:, :OUT_FEATURES].reshape(B, NUM_CLASSES, H, W)
    assert jnp.allclose(out, ref_bf16, atol=2e-3, rtol=2e-3)

    # Reference 2: full-precision PyTorch-equivalent math (loose check; bf16
    # weight quantization is the only source of difference).
    xf32 = jnp.concatenate([x, cond], axis=1).reshape(B, IN_FEATURES)
    h32 = jnp.maximum(xf32 @ w1 + b1, 0.0)
    ref_f32 = (h32 @ w2 + b2).reshape(B, NUM_CLASSES, H, W)
    assert jnp.allclose(out, ref_f32, atol=5e-2, rtol=5e-2)

    print("KERNEL_OK")
</pallas_src>

<mosaic_0001>
module attributes {stable_mosaic.version = 11 : i64} {
  func.func @_generator_kernel(%arg0: i32, %arg1: memref<8x128xbf16, #tpu.memory_space<vmem>>, %arg2: memref<8x128xbf16, #tpu.memory_space<vmem>>, %arg3: memref<128x128xbf16, #tpu.memory_space<vmem>>, %arg4: memref<128x128xbf16, #tpu.memory_space<vmem>>, %arg5: memref<1x128xf32, #tpu.memory_space<vmem>>, %arg6: memref<128x1152xbf16, #tpu.memory_space<vmem>>, %arg7: memref<1x1152xf32, #tpu.memory_space<vmem>>, %arg8: memref<8x1152xf32, #tpu.memory_space<vmem>>) attributes {dimension_semantics = [#tpu.dimension_semantics<parallel>], iteration_bounds = array<i64: 1>, scalar_prefetch = 0 : i64, scratch_operands = 0 : i64, tpu.core_type = #tpu.core_type<tc>, window_params = [{transform_indices = @transform_0, window_bounds = array<i64: 8, 128>}, {transform_indices = @transform_1, window_bounds = array<i64: 8, 128>}, {pipeline_mode = #tpu.pipeline_mode<synchronous>, transform_indices = @transform_2, window_bounds = array<i64: 128, 128>}, {pipeline_mode = #tpu.pipeline_mode<synchronous>, transform_indices = @transform_3, window_bounds = array<i64: 128, 128>}, {pipeline_mode = #tpu.pipeline_mode<synchronous>, transform_indices = @transform_4, window_bounds = array<i64: 1, 128>}, {pipeline_mode = #tpu.pipeline_mode<synchronous>, transform_indices = @transform_5, window_bounds = array<i64: 128, 1152>}, {pipeline_mode = #tpu.pipeline_mode<synchronous>, transform_indices = @transform_6, window_bounds = array<i64: 1, 1152>}, {transform_indices = @transform_7, window_bounds = array<i64: 8, 1152>}]} {
    %c0 = arith.constant 0 : index
    %c0_0 = arith.constant 0 : index
    %0 = vector.load %arg1[%c0, %c0_0] : memref<8x128xbf16, #tpu.memory_space<vmem>>, vector<8x128xbf16>
    %c0_1 = arith.constant 0 : index
    %c0_2 = arith.constant 0 : index
    %1 = vector.load %arg3[%c0_1, %c0_2] : memref<128x128xbf16, #tpu.memory_space<vmem>>, vector<128x128xbf16>
    %cst = arith.constant dense<0.000000e+00> : vector<8x128xf32>
    %2 = tpu.matmul %0, %1, %cst {dimension_numbers = #tpu.dot_dimension_numbers<[1], [0], [0], [1], [0, 0, 1, 1], [], []>} : vector<8x128xbf16>, vector<128x128xbf16>, vector<8x128xf32> -> vector<8x128xf32>
    %c0_3 = arith.constant 0 : index
    %c0_4 = arith.constant 0 : index
    %3 = vector.load %arg2[%c0_3, %c0_4] : memref<8x128xbf16, #tpu.memory_space<vmem>>, vector<8x128xbf16>
    %c0_5 = arith.constant 0 : index
    %c0_6 = arith.constant 0 : index
    %4 = vector.load %arg4[%c0_5, %c0_6] : memref<128x128xbf16, #tpu.memory_space<vmem>>, vector<128x128xbf16>
    %cst_7 = arith.constant dense<0.000000e+00> : vector<8x128xf32>
    %5 = tpu.matmul %3, %4, %cst_7 {dimension_numbers = #tpu.dot_dimension_numbers<[1], [0], [0], [1], [0, 0, 1, 1], [], []>} : vector<8x128xbf16>, vector<128x128xbf16>, vector<8x128xf32> -> vector<8x128xf32>
    %6 = arith.addf %2, %5 : vector<8x128xf32>
    %c0_8 = arith.constant 0 : index
    %c0_9 = arith.constant 0 : index
    %7 = vector.load %arg5[%c0_8, %c0_9] : memref<1x128xf32, #tpu.memory_space<vmem>>, vector<1x128xf32>
    %8 = vector.broadcast %7 : vector<1x128xf32> to vector<8x128xf32>
    %9 = arith.addf %6, %8 : vector<8x128xf32>
    %cst_10 = arith.constant 0.000000e+00 : f32
    %10 = vector.broadcast %cst_10 : f32 to vector<8x128xf32>
    %11 = arith.maximumf %9, %10 : vector<8x128xf32>
    %12 = arith.truncf %11 : vector<8x128xf32> to vector<8x128xbf16>
    %c0_11 = arith.constant 0 : index
    %c0_12 = arith.constant 0 : index
    %13 = vector.load %arg6[%c0_11, %c0_12] : memref<128x1152xbf16, #tpu.memory_space<vmem>>, vector<128x1152xbf16>
    %cst_13 = arith.constant dense<0.000000e+00> : vector<8x1152xf32>
    %14 = tpu.matmul %12, %13, %cst_13 {dimension_numbers = #tpu.dot_dimension_numbers<[1], [0], [0], [1], [0, 0, 1, 1], [], []>} : vector<8x128xbf16>, vector<128x1152xbf16>, vector<8x1152xf32> -> vector<8x1152xf32>
    %c0_14 = arith.constant 0 : index
    %c0_15 = arith.constant 0 : index
    %15 = vector.load %arg7[%c0_14, %c0_15] : memref<1x1152xf32, #tpu.memory_space<vmem>>, vector<1x1152xf32>
    %16 = vector.broadcast %15 : vector<1x1152xf32> to vector<8x1152xf32>
    %17 = arith.addf %14, %16 : vector<8x1152xf32>
    %c0_16 = arith.constant 0 : index
    %c0_17 = arith.constant 0 : index
    %18 = vector.load %arg8[%c0_16, %c0_17] : memref<8x1152xf32, #tpu.memory_space<vmem>>, vector<8x1152xf32>
    tpu.vector_store %arg8[%c0_16, %c0_17], %17 {strides = array<i32>} : memref<8x1152xf32, #tpu.memory_space<vmem>>, vector<8x1152xf32>,
    return
  }
  func.func @transform_0(%arg0: i32) -> (i32, i32) {
    %c0_i32 = arith.constant 0 : i32
    %c0_i32_0 = arith.constant 0 : i32
    return %arg0, %c0_i32 : i32, i32
  }
  func.func @transform_1(%arg0: i32) -> (i32, i32) {
    %c0_i32 = arith.constant 0 : i32
    %c0_i32_0 = arith.constant 0 : i32
    return %arg0, %c0_i32 : i32, i32
  }
  func.func @transform_2(%arg0: i32) -> (i32, i32) {
    %c0_i32 = arith.constant 0 : i32
    %c0_i32_0 = arith.constant 0 : i32
    %c0_i32_1 = arith.constant 0 : i32
    return %c0_i32, %c0_i32_0 : i32, i32
  }
  func.func @transform_3(%arg0: i32) -> (i32, i32) {
    %c0_i32 = arith.constant 0 : i32
    %c0_i32_0 = arith.constant 0 : i32
    %c0_i32_1 = arith.constant 0 : i32
    return %c0_i32, %c0_i32_0 : i32, i32
  }
  func.func @transform_4(%arg0: i32) -> (i32, i32) {
    %c0_i32 = arith.constant 0 : i32
    %c0_i32_0 = arith.constant 0 : i32
    %c0_i32_1 = arith.constant 0 : i32
    return %c0_i32, %c0_i32_0 : i32, i32
  }
  func.func @transform_5(%arg0: i32) -> (i32, i32) {
    %c0_i32 = arith.constant 0 : i32
    %c0_i32_0 = arith.constant 0 : i32
    %c0_i32_1 = arith.constant 0 : i32
    return %c0_i32, %c0_i32_0 : i32, i32
  }
  func.func @transform_6(%arg0: i32) -> (i32, i32) {
    %c0_i32 = arith.constant 0 : i32
    %c0_i32_0 = arith.constant 0 : i32
    %c0_i32_1 = arith.constant 0 : i32
    return %c0_i32, %c0_i32_0 : i32, i32
  }
  func.func @transform_7(%arg0: i32) -> (i32, i32) {
    %c0_i32 = arith.constant 0 : i32
    %c0_i32_0 = arith.constant 0 : i32
    return %arg0, %c0_i32 : i32, i32
  }
}

</mosaic_0001>

<bundles_post_ra>
// kernel: tpu_custom_call.1
= control target key start
LH: loop header
LB: loop body
LE: loop exit
PB: predicated region body
PF: predicated region fallthrough
CT: control target
= control target key end

     0   :  { %12 = vsyncpa [#allocation3], 0  ;;  %s1600_s0 = inlined_call_operand.hbm [shape: bf16[8,128], index: 0, kind: input, shape index: {}]   ;;  %s1601_s1 = inlined_call_operand.hbm [shape: bf16[8,128], index: 1, kind: input, shape index: {}]   ;;  %s1602_s2 = inlined_call_operand.hbm [shape: bf16[128,128], index: 2, kind: input, shape index: {}]   ;;  %s1603_s3 = inlined_call_operand.hbm [shape: bf16[128,128], index: 3, kind: input, shape index: {}]   ;;  %s1604_s4 = inlined_call_operand.vmem [shape: f32[1,128], index: 4, kind: input, shape index: {}]   ;;  %s1605_s5 = inlined_call_operand.hbm [shape: bf16[128,1152], index: 5, kind: input, shape index: {}]   ;;  %s1606_s6 = inlined_call_operand.hbm [shape: f32[1,1152], index: 6, kind: input, shape index: {}]   ;;  %s1607_s7 = inlined_call_operand.hbm [shape: f32[8,1152], index: 7, kind: output, shape index: {}]  }
   0x1   :  { %13 = vsyncpa [#allocation6], 0 }
   0x2   :  { %14 = vsyncpa [#allocation9], 0 }
   0x3   :  { %15 = vsyncpa [#allocation12], 0  ;;  %s33_s26 = sshll.u32 %s1601_s1, 4  ;;  %s34_s26 = int_to_ptr.hbm [resolvable:$true] %s33_s26 }
   0x4   :  { %16 = vsyncpa [#allocation4], 0  ;;  %s1525_s27 = smov [#allocation5]   ;;  %s56_s8 = sshll.u32 %s1603_s3, 4  ;;  %s57_s8 = int_to_ptr.hbm [resolvable:$true] %s56_s8 }
   0x5   :  { %s35_s28 = sshll.u32 %s1525_s27, 4  ;;  %s1526_s9 = smov [#allocation8]   ;;  %s36_s28 = int_to_ptr.vmem [resolvable:$true] %s35_s28 }
   0x6   :  { %38 = dma.hbm_to_vmem [thread:$0]  %s34_s26, 64, %s36_s28, [#allocation6]  }
   0x7   :  { %s58_s10 = sshll.u32 %s1526_s9, 4  ;;  %s22_s13 = sshll.u32 %s1600_s0, 4  ;;  %s59_s10 = int_to_ptr.vmem [resolvable:$true] %s58_s10  ;;  %s23_s13 = int_to_ptr.hbm [resolvable:$true] %s22_s13 }
   0x8   :  { %s1527_s1 = smov 64   ;;  %s1528_s14 = smov 4  }
   0x9   :  { %64 = dma.hbm_to_vmem [thread:$0]  %s57_s8, 1024, %s59_s10, [#allocation9], %s1527_s1, %s1527_s1, %s1528_s14  }
   0xa   :  { %s43_s17 = sshll.u32 %s1602_s2, 4  ;;  %s1529_s18 = smov [#allocation2]   ;;  %s44_s17 = int_to_ptr.hbm [resolvable:$true] %s43_s17 }
   0xb   :  { %s24_s19 = sshll.u32 %s1529_s18, 4  ;;  %s1530_s3 = smov [#allocation7]   ;;  %s25_s19 = int_to_ptr.vmem [resolvable:$true] %s24_s19 }
   0xc   :  { %27 = dma.hbm_to_vmem [thread:$0]  %s23_s13, 64, %s25_s19, [#allocation3]  }
   0xd   :  { %s45_s20 = sshll.u32 %s1530_s3, 4  ;;  %s71_s0 = sshll.u32 %s1605_s5, 4  ;;  %s46_s20 = int_to_ptr.vmem [resolvable:$true] %s45_s20  ;;  %s72_s0 = int_to_ptr.hbm [resolvable:$true] %s71_s0 }
   0xe   :  { %51 = dma.hbm_to_vmem [thread:$0]  %s44_s17, 1024, %s46_s20, [#allocation6], %s1527_s1, %s1527_s1, %s1528_s14  }
   0xf   :  { %s1531_s23 = smov [#allocation10]   ;;  %s85_s2 = sshll.u32 %s1606_s6, 4  ;;  %s86_s2 = int_to_ptr.hbm [resolvable:$true] %s85_s2 }
  0x10   :  { %s73_s24 = sshll.u32 %s1531_s23, 4  ;;  %s1532_s27 = smov 576   ;;  %s74_s24 = int_to_ptr.vmem [resolvable:$true] %s73_s24 }
  0x11   :  { %s1533_s28 = smov 36   ;;  %s1534_s29 = smov [#allocation11]  }
  0x12   :  { %79 = dma.hbm_to_vmem [thread:$0]  %s72_s0, 9216, %s74_s24, [#allocation9], %s1532_s27, %s1532_s27, %s1533_s28  }
  0x13   :  { %s87_s30 = sshll.u32 %s1534_s29, 4  ;;  %s88_s30 = int_to_ptr.vmem [resolvable:$true] %s87_s30 }
  0x14   :  { %90 = dma.hbm_to_vmem [thread:$0]  %s86_s2, 144, %s88_s30, [#allocation12]  }
  0x15   :  { %1515 = dma.done.wait [#allocation3], 64  }
  0x16   :  { %1516 = vsyncadd [#allocation3], 4294967232 }
  0x17   :  { %1517 = dma.done.wait [#allocation6], 1088  }
  0x18   :  { %1518 = vsyncadd [#allocation6], 4294966208 }
  0x19   :  { %1519 = dma.done.wait [#allocation9], 10240  }
  0x1a   :  { %1520 = vsyncadd [#allocation9], 4294957056 }
  0x1b   :  { %1521 = dma.done.wait [#allocation12], 144  }
  0x1c   :  { %1522 = vsyncadd [#allocation12], 4294967152  ;;  %v1261_v0 = vld [vmem:[#allocation8 + $0x38] sm:$0xff]  ;;  %v1260_v2 = vld [vmem:[#allocation8 + $0x30] sm:$0xff]  ;;  %s881_s11 = sshll.u32 %s1607_s7, 4  ;;  %s882_s11 = int_to_ptr.hbm [resolvable:$true] %s881_s11 }
  0x1d   :  { %v1253_v1 = vld [vmem:[#allocation7 + $0x38] sm:$0xff]  ;;  %197 = vmatpush.bf16.msra.mxu0 %v1261_v0  ;;  %v1252_v3 = vld [vmem:[#allocation7 + $0x30] sm:$0xff]  ;;  %v1259_v4 = vld [vmem:[#allocation8 + $0x28] sm:$0xff] }
  0x1e   :  { %258 = vmatpush.bf16.msra.mxu1 %v1253_v1  ;;  %v1251_v5 = vld [vmem:[#allocation7 + $0x28] sm:$0xff]  ;;  %v1212_v6 = vld [vmem:[#allocation10 + $0x1f8] sm:$0xf]  ;;  %v1329_v7 = vld [vmem:[#allocation10 + $0x218] sm:$0xf0] }
  0x1f   :  { %v1176_v8 = vld [vmem:[#allocation10 + $0x1b0] sm:$0xf]  ;;  %v1213_v9 = vor.u32 %v1329_v7, %v1212_v6  ;;  %v1320_v10 = vld [vmem:[#allocation10 + $0x1d0] sm:$0xf0]  ;;  %v1325_v11 = vld [vmem:[#allocation10 + $0x1fc] sm:$0xf] }
  0x20   :  { %v1258_v12 = vld [vmem:[#allocation8 + $0x20] sm:$0xff]  ;;  %v1177_v13 = vor.u32 %v1320_v10, %v1176_v8  ;;  %v1140_v16 = vld [vmem:[#allocation10 + $0x168] sm:$0xf]  ;;  %v1311_v17 = vld [vmem:[#allocation10 + $0x188] sm:$0xf0] }
  0x21   :  { %198 = vmatpush.bf16.msra.mxu0 %v1260_v2  ;;  %748 = vmatpush.bf16.msra.mxu2 %v1213_v9  ;;  %v1214_v14 = vld [vmem:[#allocation10 + $0x21c] sm:$0xf0]  ;;  %v1316_v19 = vld [vmem:[#allocation10 + $0x1b4] sm:$0xf]  ;;  %v1178_v20 = vld [vmem:[#allocation10 + $0x1d4] sm:$0xf0]  ;;  %v1141_v24 = vor.u32 %v1311_v17, %v1140_v16 }
  0x22   :  { %259 = vmatpush.bf16.msra.mxu1 %v1252_v3  ;;  %v1250_v15 = vld [vmem:[#allocation7 + $0x20] sm:$0xff]  ;;  %v1217_v18 = vor.u32 %v1325_v11, %v1214_v14  ;;  %v1181_v21 = vor.u32 %v1316_v19, %v1178_v20  ;;  %v1257_v22 = vld [vmem:[#allocation8 + $0x18] sm:$0xff]  ;;  %v1307_v27 = vld [vmem:[#allocation10 + $0x16c] sm:$0xf] }
  0x23   :  { %v1249_v23 = vld [vmem:[#allocation7 + $0x18] sm:$0xff]  ;;  %v1104_v25 = vld [vmem:[#allocation10 + $0x120] sm:$0xf]  ;;  %v1302_v26 = vld [vmem:[#allocation10 + $0x140] sm:$0xf0] }
  0x24   :  { %761 = vmatpush.bf16.msra.mxu3 %v1217_v18  ;;  %v1142_v28 = vld [vmem:[#allocation10 + $0x18c] sm:$0xf0]  ;;  %v1105_v31 = vor.u32 %v1302_v26, %v1104_v25  ;;  %v1298_v32 = vld [vmem:[#allocation10 + $0x124] sm:$0xf]  ;;  %v1106_v33 = vld [vmem:[#allocation10 + $0x144] sm:$0xf0] }
  0x25   :  { %199 = vmatpush.bf16.msra.mxu0 %v1259_v4  ;;  %749 = vmatpush.bf16.msra.mxu2 %v1177_v13  ;;  %v1145_v29 = vor.u32 %v1307_v27, %v1142_v28  ;;  %v1256_v30 = vld [vmem:[#allocation8 + $0x10] sm:$0xff]  ;;  %v1068_v35 = vld [vmem:[#allocation10 + $0xd8] sm:$0xf]  ;;  %v1293_v36 = vld [vmem:[#allocation10 + $0xf8] sm:$0xf0]  ;;  %v1109_v37 = vor.u32 %v1298_v32, %v1106_v33 }
  0x26   :  { %260 = vmatpush.bf16.msra.mxu1 %v1251_v5  ;;  %v1248_v34 = vld [vmem:[#allocation7 + $0x10] sm:$0xff]  ;;  %v1255_v38 = vld [vmem:[#allocation8 + $0x8] sm:$0xff]  ;;  %v1069_v39 = vor.u32 %v1293_v36, %v1068_v35  ;;  %v1289_v40 = vld [vmem:[#allocation10 + $0xdc] sm:$0xf] }
  0x27   :  { %v1070_v41 = vld [vmem:[#allocation10 + $0xfc] sm:$0xf0]  ;;  %v1247_v42 = vld [vmem:[#allocation7 + $0x8] sm:$0xff]  ;;  %v1032_v43 = vld [vmem:[#allocation10 + $0x90] sm:$0xf] }
  0x28   :  { %762 = vmatpush.bf16.msra.mxu3 %v1181_v21  ;;  %v1284_v44 = vld [vmem:[#allocation10 + $0xb0] sm:$0xf0]  ;;  %v1220_v45 = vld [vmem:[#allocation10 + $0x200] sm:$0xf]  ;;  %v1330_v46 = vld [vmem:[#allocation10 + $0x220] sm:$0xf0]  ;;  %v1073_v49 = vor.u32 %v1289_v40, %v1070_v41 }
  0x29   :  { %200 = vmatpush.bf16.msra.mxu0 %v1258_v12  ;;  %750 = vmatpush.bf16.msra.mxu2 %v1141_v24  ;;  %v1326_v47 = vld [vmem:[#allocation10 + $0x204] sm:$0xf]  ;;  %v1222_v48 = vld [vmem:[#allocation10 + $0x224] sm:$0xf0]  ;;  %v1033_v50 = vor.u32 %v1284_v44, %v1032_v43  ;;  %v1280_v51 = vld [vmem:[#allocation10 + $0x94] sm:$0xf]  ;;  %v1221_v55 = vor.u32 %v1330_v46, %v1220_v45 }
  0x2a   :  { %261 = vmatpush.bf16.msra.mxu1 %v1250_v15  ;;  %v1034_v52 = vld [vmem:[#allocation10 + $0xb4] sm:$0xf0]  ;;  %v1254_v53 = vld [vmem:[#allocation8] sm:$0xff]  ;;  %v1225_v56 = vor.u32 %v1326_v47, %v1222_v48  ;;  %v996_v58 = vld [vmem:[#allocation10 + $0x48] sm:$0xf] }
  0x2b   :  { %v1246_v54 = vld [vmem:[#allocation7] sm:$0xff]  ;;  %v1184_v57 = vld [vmem:[#allocation10 + $0x1b8] sm:$0xf]  ;;  %v1275_v59 = vld [vmem:[#allocation10 + $0x68] sm:$0xf0]  ;;  %v1037_v63 = vor.u32 %v1280_v51, %v1034_v52 }
  0x2c   :  { %763 = vmatpush.bf16.msra.mxu3 %v1145_v29  ;;  %v1321_v60 = vld [vmem:[#allocation10 + $0x1d8] sm:$0xf0]  ;;  %v1186_v62 = vld [vmem:[#allocation10 + $0x1dc] sm:$0xf0]  ;;  %v1271_v0 = vld [vmem:[#allocation10 + $0x4c] sm:$0xf]  ;;  %v997_v5 = vor.u32 %v1275_v59, %v996_v58 }
  0x2d   :  { %201 = vmatpush.bf16.msra.mxu0 %v1257_v22  ;;  %751 = vmatpush.bf16.msra.mxu2 %v1105_v31  ;;  %v1317_v61 = vld [vmem:[#allocation10 + $0x1bc] sm:$0xf]  ;;  %v998_v1 = vld [vmem:[#allocation10 + $0x6c] sm:$0xf0]  ;;  %v115_v3 = vld [vmem:[#allocation2] sm:$0xf]  ;;  %v1185_v6 = vor.u32 %v1321_v60, %v1184_v57 }
  0x2e   :  { %262 = vmatpush.bf16.msra.mxu1 %v1249_v23  ;;  %v132_v2 = vld [vmem:[#allocation5] sm:$0xf]  ;;  %v1148_v4 = vld [vmem:[#allocation10 + $0x170] sm:$0xf]  ;;  %v1189_v7 = vor.u32 %v1317_v61, %v1186_v62  ;;  %v1312_v8 = vld [vmem:[#allocation10 + $0x190] sm:$0xf0]  ;;  %v1001_v14 = vor.u32 %v1271_v0, %v998_v1 }
  0x2f   :  { %v960_v9 = vld [vmem:[#allocation10] sm:$0xf]  ;;  %v1266_v10 = vld [vmem:[#allocation10 + $0x20] sm:$0xf0]  ;;  %v1308_v11 = vld [vmem:[#allocation10 + $0x174] sm:$0xf]  ;;  %v1149_v21 = vor.u32 %v1312_v8, %v1148_v4 }
  0x30   :  { %764 = vmatpush.bf16.msra.mxu3 %v1109_v37  ;;  %v1150_v12 = vld [vmem:[#allocation10 + $0x194] sm:$0xf0]  ;;  %v1228_v13 = vld [vmem:[#allocation10 + $0x208] sm:$0xf]  ;;  %v1331_v15 = vld [vmem:[#allocation10 + $0x228] sm:$0xf0]  ;;  %v961_v18 = vor.u32 %v1266_v10, %v960_v9 }
  0x31   :  { %202 = vmatpush.bf16.msra.mxu0 %v1256_v30  ;;  %752 = vmatpush.bf16.msra.mxu2 %v1069_v39  ;;  %v1262_v16 = vld [vmem:[#allocation10 + $0x4] sm:$0xf]  ;;  %v962_v17 = vld [vmem:[#allocation10 + $0x24] sm:$0xf0]  ;;  %v1327_v19 = vld [vmem:[#allocation10 + $0x20c] sm:$0xf]  ;;  %v1153_v22 = vor.u32 %v1308_v11, %v1150_v12  ;;  %v1229_v27 = vor.u32 %v1331_v15, %v1228_v13 }
  0x32   :  { %263 = vmatpush.bf16.msra.mxu1 %v1248_v34  ;;  %v1230_v20 = vld [vmem:[#allocation10 + $0x22c] sm:$0xf0]  ;;  %v1112_v23 = vld [vmem:[#allocation10 + $0x128] sm:$0xf]  ;;  %v1303_v24 = vld [vmem:[#allocation10 + $0x148] sm:$0xf0]  ;;  %v965_v28 = vor.u32 %v1262_v16, %v962_v17 }
  0x33   :  { %v1299_v25 = vld [vmem:[#allocation10 + $0x12c] sm:$0xf]  ;;  %v1114_v26 = vld [vmem:[#allocation10 + $0x14c] sm:$0xf0]  ;;  %v1192_v29 = vld [vmem:[#allocation10 + $0x1c0] sm:$0xf]  ;;  %v1233_v31 = vor.u32 %v1327_v19, %v1230_v20  ;;  %v1113_v34 = vor.u32 %v1303_v24, %v1112_v23 }
  0x34   :  { %765 = vmatpush.bf16.msra.mxu3 %v1073_v49  ;;  %v1322_v30 = vld [vmem:[#allocation10 + $0x1e0] sm:$0xf0]  ;;  %v1194_v33 = vld [vmem:[#allocation10 + $0x1e4] sm:$0xf0]  ;;  %v1117_v35 = vor.u32 %v1299_v25, %v1114_v26  ;;  %v1076_v36 = vld [vmem:[#allocation10 + $0xe0] sm:$0xf] }
  0x35   :  { %203 = vmatpush.bf16.msra.mxu0 %v1255_v38  ;;  %753 = vmatpush.bf16.msra.mxu2 %v1033_v50  ;;  %v1318_v32 = vld [vmem:[#allocation10 + $0x1c4] sm:$0xf]  ;;  %v1078_v39 = vld [vmem:[#allocation10 + $0x104] sm:$0xf0]  ;;  %v1193_v40 = vor.u32 %v1322_v30, %v1192_v29  ;;  %v1156_v41 = vld [vmem:[#allocation10 + $0x178] sm:$0xf] }
  0x36   :  { %264 = vmatpush.bf16.msra.mxu1 %v1247_v42  ;;  %v1294_v37 = vld [vmem:[#allocation10 + $0x100] sm:$0xf0]  ;;  %v1313_v42 = vld [vmem:[#allocation10 + $0x198] sm:$0xf0]  ;;  %v1197_v43 = vor.u32 %v1318_v32, %v1194_v33  ;;  %v1040_v46 = vld [vmem:[#allocation10 + $0x98] sm:$0xf] }
  0x37   :  { %v1290_v38 = vld [vmem:[#allocation10 + $0xe4] sm:$0xf]  ;;  %v1077_v44 = vor.u32 %v1294_v37, %v1076_v36  ;;  %v1285_v47 = vld [vmem:[#allocation10 + $0xb8] sm:$0xf0]  ;;  %v1042_v49 = vld [vmem:[#allocation10 + $0xbc] sm:$0xf0]  ;;  %v1157_v50 = vor.u32 %v1313_v42, %v1156_v41 }
  0x38   :  { %766 = vmatpush.bf16.msra.mxu3 %v1037_v63  ;;  %v1081_v45 = vor.u32 %v1290_v38, %v1078_v39  ;;  %v1281_v48 = vld [vmem:[#allocation10 + $0x9c] sm:$0xf]  ;;  %v1120_v51 = vld [vmem:[#allocation10 + $0x130] sm:$0xf]  ;;  %v1304_v52 = vld [vmem:[#allocation10 + $0x150] sm:$0xf0] }
  0x39   :  { %204 = vmatpush.bf16.msra.mxu0 %v1254_v53  ;;  %754 = vmatpush.bf16.msra.mxu2 %v997_v5  ;;  %v1041_v53 = vor.u32 %v1285_v47, %v1040_v46  ;;  %v1272_v57 = vld [vmem:[#allocation10 + $0x54] sm:$0xf]  ;;  %v1006_v58 = vld [vmem:[#allocation10 + $0x74] sm:$0xf0]  ;;  %v1121_v59 = vor.u32 %v1304_v52, %v1120_v51  ;;  %v1084_v60 = vld [vmem:[#allocation10 + $0xe8] sm:$0xf] }
  0x3a   :  { %265 = vmatpush.bf16.msra.mxu1 %v1246_v54  ;;  %v1045_v54 = vor.u32 %v1281_v48, %v1042_v49  ;;  %v1295_v61 = vld [vmem:[#allocation10 + $0x108] sm:$0xf0]  ;;  %v1009_v63 = vor.u32 %v1272_v57, %v1006_v58  ;;  %v968_v0 = vld [vmem:[#allocation10 + $0x8] sm:$0xf]  ;;  %v1236_v4 = vld [vmem:[#allocation10 + $0x210] sm:$0xf] }
  0x3b   :  { %v1267_v1 = vld [vmem:[#allocation10 + $0x28] sm:$0xf0]  ;;  %v1085_v5 = vor.u32 %v1295_v61, %v1084_v60  ;;  %v1238_v8 = vld [vmem:[#allocation10 + $0x234] sm:$0xf0]  ;;  %v1200_v13 = vld [vmem:[#allocation10 + $0x1c8] sm:$0xf] }
  0x3c   :  { %205 = vmatmul.bf16.vlgmr.msra.gmra.mxu0 %v132_v2  ;;  %767 = vmatpush.bf16.msra.mxu3 %v1001_v14  ;;  %v1263_v2 = vld [vmem:[#allocation10 + $0xc] sm:$0xf]  ;;  %v969_v9 = vor.u32 %v1267_v1, %v968_v0  ;;  %v1202_v16 = vld [vmem:[#allocation10 + $0x1ec] sm:$0xf0]  ;;  %v1048_v19 = vld [vmem:[#allocation10 + $0xa0] sm:$0xf] }
  0x3d   :  { %774 = vmatpush.bf16.msrb.mxu0 %v1221_v55  ;;  %266 = vmatmul.bf16.vlgmr.msra.gmra.mxu1 %v115_v3  ;;  %v1004_v55 = vld [vmem:[#allocation10 + $0x50] sm:$0xf]  ;;  %v1323_v14 = vld [vmem:[#allocation10 + $0x1e8] sm:$0xf0]  ;;  %v1286_v20 = vld [vmem:[#allocation10 + $0xc0] sm:$0xf0] }
  0x3e   :  { %787 = vmatpush.bf16.msrb.mxu1 %v1225_v56  ;;  %755 = vmatpush.bf16.msra.mxu2 %v961_v18  ;;  %v1276_v56 = vld [vmem:[#allocation10 + $0x70] sm:$0xf0]  ;;  %v970_v3 = vld [vmem:[#allocation10 + $0x2c] sm:$0xf0]  ;;  %v1319_v15 = vld [vmem:[#allocation10 + $0x1cc] sm:$0xf]  ;;  %v1201_v17 = vor.u32 %v1323_v14, %v1200_v13 }
  0x3f   :  { %v1005_v62 = vor.u32 %v1276_v56, %v1004_v55  ;;  %v973_v10 = vor.u32 %v1263_v2, %v970_v3  ;;  %v1205_v18 = vor.u32 %v1319_v15, %v1202_v16  ;;  %v1158_v23 = vld [vmem:[#allocation10 + $0x19c] sm:$0xf0]  ;;  %v1314_v26 = vld [vmem:[#allocation10 + $0x1a0] sm:$0xf0]  ;;  %v1277_v32 = vld [vmem:[#allocation10 + $0x78] sm:$0xf0] }
  0x40   :  { %768 = vmatpush.bf16.msra.mxu3 %v965_v28  ;;  %v1164_v24 = vld [vmem:[#allocation10 + $0x180] sm:$0xf]  ;;  %v1166_v28 = vld [vmem:[#allocation10 + $0x1a4] sm:$0xf0]  ;;  %v1128_v36 = vld [vmem:[#allocation10 + $0x138] sm:$0xf] }
  0x41   :  { %775 = vmatpush.bf16.msrb.mxu0 %v1185_v6  ;;  %v1332_v6 = vld [vmem:[#allocation10 + $0x230] sm:$0xf0]  ;;  %v1165_v29 = vor.u32 %v1314_v26, %v1164_v24  ;;  %v1305_v38 = vld [vmem:[#allocation10 + $0x158] sm:$0xf0]  ;;  %v1291_v46 = vld [vmem:[#allocation10 + $0xec] sm:$0xf] }
  0x42   :  { %788 = vmatpush.bf16.msrb.mxu1 %v1189_v7  ;;  %800 = vmatpush.bf16.msrb.mxu2 %v1229_v27  ;;  %v1328_v7 = vld [vmem:[#allocation10 + $0x214] sm:$0xf]  ;;  %v1237_v11 = vor.u32 %v1332_v6, %v1236_v4  ;;  %v1310_v27 = vld [vmem:[#allocation10 + $0x184] sm:$0xf]  ;;  %v1301_v39 = vld [vmem:[#allocation10 + $0x13c] sm:$0xf]  ;;  %v1129_v41 = vor.u32 %v1305_v38, %v1128_v36 }
  0x43   :  { %v1241_v12 = vor.u32 %v1328_v7, %v1238_v8  ;;  %v1169_v30 = vor.u32 %v1310_v27, %v1166_v28  ;;  %v1086_v47 = vld [vmem:[#allocation10 + $0x10c] sm:$0xf0]  ;;  %v1292_v51 = vld [vmem:[#allocation10 + $0xf4] sm:$0xf]  ;;  %v1094_v52 = vld [vmem:[#allocation10 + $0x114] sm:$0xf0] }
  0x44   :  { %813 = vmatpush.bf16.msrb.mxu3 %v1233_v31  ;;  %v1012_v31 = vld [vmem:[#allocation10 + $0x58] sm:$0xf]  ;;  %v1092_v48 = vld [vmem:[#allocation10 + $0xf0] sm:$0xf]  ;;  %v1089_v49 = vor.u32 %v1291_v46, %v1086_v47  ;;  %v1282_v55 = vld [vmem:[#allocation10 + $0xa4] sm:$0xf] }
  0x45   :  { %776 = vmatpush.bf16.msrb.mxu0 %v1149_v21  ;;  %v1049_v21 = vor.u32 %v1286_v20, %v1048_v19  ;;  %v1013_v33 = vor.u32 %v1277_v32, %v1012_v31  ;;  %v1050_v56 = vld [vmem:[#allocation10 + $0xc4] sm:$0xf0]  ;;  %v1283_v60 = vld [vmem:[#allocation10 + $0xac] sm:$0xf]  ;;  %v1058_v61 = vld [vmem:[#allocation10 + $0xcc] sm:$0xf0] }
  0x46   :  { %789 = vmatpush.bf16.msrb.mxu1 %v1153_v22  ;;  %801 = vmatpush.bf16.msrb.mxu2 %v1193_v40  ;;  %v1309_v22 = vld [vmem:[#allocation10 + $0x17c] sm:$0xf]  ;;  %v1130_v40 = vld [vmem:[#allocation10 + $0x15c] sm:$0xf0]  ;;  %v1056_v57 = vld [vmem:[#allocation10 + $0xa8] sm:$0xf]  ;;  %v1053_v58 = vor.u32 %v1282_v55, %v1050_v56 }
  0x47   :  { %v1161_v25 = vor.u32 %v1309_v22, %v1158_v23  ;;  %v1133_v42 = vor.u32 %v1301_v39, %v1130_v40  ;;  %v1273_v0 = vld [vmem:[#allocation10 + $0x5c] sm:$0xf]  ;;  %v1014_v1 = vld [vmem:[#allocation10 + $0x7c] sm:$0xf0]  ;;  %v1278_v4 = vld [vmem:[#allocation10 + $0x80] sm:$0xf0] }
  0x48   :  { %814 = vmatpush.bf16.msrb.mxu3 %v1197_v43  ;;  %v976_v43 = vld [vmem:[#allocation10 + $0x10] sm:$0xf]  ;;  %v1020_v2 = vld [vmem:[#allocation10 + $0x60] sm:$0xf]  ;;  %v1017_v3 = vor.u32 %v1273_v0, %v1014_v1  ;;  %v1022_v6 = vld [vmem:[#allocation10 + $0x84] sm:$0xf0] }
  0x49   :  { %777 = vmatpush.bf16.msrb.mxu0 %v1113_v34  ;;  %v1300_v34 = vld [vmem:[#allocation10 + $0x134] sm:$0xf]  ;;  %v1021_v7 = vor.u32 %v1278_v4, %v1020_v2  ;;  %v1269_v13 = vld [vmem:[#allocation10 + $0x38] sm:$0xf0]  ;;  %v986_v15 = vld [vmem:[#allocation10 + $0x3c] sm:$0xf0] }
  0x4a   :  { %790 = vmatpush.bf16.msrb.mxu1 %v1117_v35  ;;  %802 = vmatpush.bf16.msrb.mxu2 %v1157_v50  ;;  %v1122_v35 = vld [vmem:[#allocation10 + $0x154] sm:$0xf0]  ;;  %v1296_v50 = vld [vmem:[#allocation10 + $0x110] sm:$0xf0]  ;;  %v1265_v14 = vld [vmem:[#allocation10 + $0x1c] sm:$0xf] }
  0x4b   :  { %v1125_v37 = vor.u32 %v1300_v34, %v1122_v35  ;;  %v1244_v23 = vld [vmem:[#allocation10 + $0x218] sm:$0xf]  ;;  %v1333_v24 = vld [vmem:[#allocation10 + $0x238] sm:$0xf0]  ;;  %v1324_v31 = vld [vmem:[#allocation10 + $0x1f0] sm:$0xf0] }
  0x4c   :  { %815 = vmatpush.bf16.msrb.mxu3 %v1161_v25  ;;  %v1245_v27 = vor.u32 %v1333_v24, %v1244_v23  ;;  %v1315_v34 = vld [vmem:[#allocation10 + $0x1a8] sm:$0xf0]  ;;  %v1136_v36 = vld [vmem:[#allocation10 + $0x140] sm:$0xf]  ;;  %v1100_v39 = vld [vmem:[#allocation10 + $0xf8] sm:$0xf] }
  0x4d   :  { %778 = vmatpush.bf16.msrb.mxu0 %v1077_v44  ;;  %v1268_v44 = vld [vmem:[#allocation10 + $0x30] sm:$0xf0]  ;;  %v1297_v40 = vld [vmem:[#allocation10 + $0x118] sm:$0xf0]  ;;  %v1279_v46 = vld [vmem:[#allocation10 + $0x88] sm:$0xf0] }
  0x4e   :  { %791 = vmatpush.bf16.msrb.mxu1 %v1081_v45  ;;  %803 = vmatpush.bf16.msrb.mxu2 %v1121_v59  ;;  %v977_v45 = vor.u32 %v1268_v44, %v976_v43  ;;  %v1287_v59 = vld [vmem:[#allocation10 + $0xc8] sm:$0xf0]  ;;  %v1288_v43 = vld [vmem:[#allocation10 + $0xd0] sm:$0xf0] }
  0x50   :  { %816 = vmatpush.bf16.msrb.mxu3 %v1125_v37  ;;  %v1306_v37 = vld [vmem:[#allocation10 + $0x160] sm:$0xf0] }
  0x51   :  { %779 = vmatpush.bf16.msrb.mxu0 %v1041_v53  ;;  %v1093_v53 = vor.u32 %v1296_v50, %v1092_v48  ;;  %v1137_v38 = vor.u32 %v1306_v37, %v1136_v36  ;;  %v992_v48 = vld [vmem:[#allocation10 + $0x20] sm:$0xf] }
  0x52   :  { %792 = vmatpush.bf16.msrb.mxu1 %v1045_v54  ;;  %804 = vmatpush.bf16.msrb.mxu2 %v1085_v5  ;;  %v1097_v54 = vor.u32 %v1292_v51, %v1094_v52  ;;  %v1274_v5 = vld [vmem:[#allocation10 + $0x64] sm:$0xf] }
  0x53   :  { %v1025_v8 = vor.u32 %v1274_v5, %v1022_v6  ;;  %v358_v51 = vld [vmem:[#allocation11] sm:$0xff] }
  0x54   :  { %817 = vmatpush.bf16.msrb.mxu3 %v1089_v49  ;;  %v1270_v49 = vld [vmem:[#allocation10 + $0x40] sm:$0xf0]  ;;  %v364_v52 = vperm.slane %v358_v51, 2  ;;  %v368_v4 = vperm.slane %v358_v51, 6  ;;  %v369_v5 = vperm.slane %v358_v51, 7 }
  0x55   :  { %780 = vmatpush.bf16.msrb.mxu0 %v1005_v62  ;;  %v1057_v62 = vor.u32 %v1287_v59, %v1056_v57  ;;  %v993_v50 = vor.u32 %v1270_v49, %v992_v48  ;;  %v363_v59 = vperm.slane %v358_v51, 1 }
  0x56   :  { %793 = vmatpush.bf16.msrb.mxu1 %v1009_v63  ;;  %805 = vmatpush.bf16.msrb.mxu2 %v1049_v21  ;;  %v1061_v63 = vor.u32 %v1283_v60, %v1058_v61 }
  0x58   :  { %818 = vmatpush.bf16.msrb.mxu3 %v1053_v58  ;;  %v362_v58 = vperm.slane %v358_v51, 0 }
  0x59   :  { %781 = vmatpush.bf16.msrb.mxu0 %v969_v9  ;;  %v1264_v9 = vld [vmem:[#allocation10 + $0x14] sm:$0xf] }
  0x5a   :  { %794 = vmatpush.bf16.msrb.mxu1 %v973_v10  ;;  %806 = vmatpush.bf16.msrb.mxu2 %v1013_v33  ;;  %v978_v10 = vld [vmem:[#allocation10 + $0x34] sm:$0xf0]  ;;  %v1172_v33 = vld [vmem:[#allocation10 + $0x188] sm:$0xf] }
  0x5b   :  { %v1173_v35 = vor.u32 %v1315_v34, %v1172_v33 }
  0x5c   :  { %819 = vmatpush.bf16.msrb.mxu3 %v1017_v3 }
  0x5d   :  { %826 = vmatpush.bf16.msra.mxu0 %v1237_v11  ;;  %v984_v11 = vld [vmem:[#allocation10 + $0x18] sm:$0xf] }
  0x5e   :  { %839 = vmatpush.bf16.msra.mxu1 %v1241_v12  ;;  %807 = vmatpush.bf16.msrb.mxu2 %v977_v45  ;;  %v981_v12 = vor.u32 %v1264_v9, %v978_v10  ;;  %v985_v16 = vor.u32 %v1269_v13, %v984_v11  ;;  %v1028_v45 = vld [vmem:[#allocation10 + $0x68] sm:$0xf]  ;;  %v366_v10 = vperm.slane %v358_v51, 4  ;;  %v367_v11 = vperm.slane %v358_v51, 5 }
  0x5f   :  { %v1029_v47 = vor.u32 %v1279_v46, %v1028_v45 }
  0x60   :  { %820 = vmatpush.bf16.msrb.mxu3 %v981_v12 }
  0x61   :  { %827 = vmatpush.bf16.msra.mxu0 %v1201_v17  ;;  %v989_v17 = vor.u32 %v1265_v14, %v986_v15 }
  0x62   :  { %840 = vmatpush.bf16.msra.mxu1 %v1205_v18  ;;  %v1345_v18 = vld [vmem:[%s1604_s4] ss:$0 sm:$0xff]  ;;  %s1535_s4 = smov [#allocation13]  }
  0x63   :  { %s879_s8 = sshll.u32 %s1535_s4, 4  ;;  %s880_s8 = int_to_ptr.vmem [resolvable:$true] %s879_s8 }
  0x65   :  { %828 = vmatpush.bf16.msra.mxu0 %v1165_v29 }
  0x66   :  { %841 = vmatpush.bf16.msra.mxu1 %v1169_v30  ;;  %v1208_v30 = vld [vmem:[#allocation10 + $0x1d0] sm:$0xf] }
  0x67   :  { %v1209_v32 = vor.u32 %v1324_v31, %v1208_v30 }
  0x69   :  { %829 = vmatpush.bf16.msra.mxu0 %v1129_v41  ;;  %v1101_v41 = vor.u32 %v1297_v40, %v1100_v39 }
  0x6a   :  { %842 = vmatpush.bf16.msra.mxu1 %v1133_v42  ;;  %v1064_v42 = vld [vmem:[#allocation10 + $0xb0] sm:$0xf] }
  0x6b   :  { %v1065_v44 = vor.u32 %v1288_v43, %v1064_v42 }
  0x6d   :  { %830 = vmatpush.bf16.msra.mxu0 %v1093_v53  ;;  %v365_v53 = vperm.slane %v358_v51, 3 }
  0x6e   :  { %843 = vmatpush.bf16.msra.mxu1 %v1097_v54 }
  0x71   :  { %831 = vmatpush.bf16.msra.mxu0 %v1057_v62 }
  0x72   :  { %844 = vmatpush.bf16.msra.mxu1 %v1061_v63 }
  0x75   :  { %832 = vmatpush.bf16.msra.mxu0 %v1021_v7 }
  0x76   :  { %845 = vmatpush.bf16.msra.mxu1 %v1025_v8 }
  0x79   :  { %833 = vmatpush.bf16.msra.mxu0 %v985_v16 }
  0x7a   :  { %846 = vmatpush.bf16.msra.mxu1 %v989_v17 }
  0xb9   :  { %v206_v19 = vpop.f32.mrf.mxu0 }
  0xba   :  { %v267_v20 = vpop.f32.mrf.mxu1 }
  0xbb   :  { %v268_v21 = vadd.f32 %v267_v20, %v206_v19  ;;  %v1346_v20 = vld [vmem:[#allocation11 + $0x8] ss:$0 sm:$0xff] }
  0xbd   :  { %v275_v22 = vadd.f32 %v1345_v18, %v268_v21 }
  0xbf   :  { %v276_v25 = vmax.f32 %v275_v22, 0.0 }
  0xc1   :  { %v277_v26 = vpack.c.bf16 %v276_v25, %v276_v25  ;;  %v208_v28 = vpop.f32.mrf.mxu0 }
  0xc2   :  { %v269_v29 = vpop.f32.mrf.mxu1 }
  0xc3   :  { %756 = vmatmul.bf16.vlgmr.msra.gmra.mxu2 %v277_v26  ;;  %769 = vmatmul.bf16.vlgmr.msra.gmra.mxu3 %v277_v26 }
  0xc4   :  { %782 = vmatmul.bf16.vlgmr.msrb.gmra.mxu0 %v277_v26  ;;  %795 = vmatmul.bf16.vlgmr.msrb.gmra.mxu1 %v277_v26 }
  0xc5   :  { %852 = vmatpush.bf16.msra.mxu2 %v1245_v27 }
  0xc9   :  { %853 = vmatpush.bf16.msra.mxu2 %v1209_v32 }
  0xcd   :  { %854 = vmatpush.bf16.msra.mxu2 %v1173_v35 }
  0xd1   :  { %855 = vmatpush.bf16.msra.mxu2 %v1137_v38 }
  0xd3   :  { %808 = vmatmul.bf16.vlgmr.msrb.gmra.mxu2 %v277_v26  ;;  %821 = vmatmul.bf16.vlgmr.msrb.gmra.mxu3 %v277_v26 }
  0xd4   :  { %834 = vmatmul.bf16.vlgmr.msra.gmra.mxu0 %v277_v26  ;;  %847 = vmatmul.bf16.vlgmr.msra.gmra.mxu1 %v277_v26 }
  0xd5   :  { %856 = vmatpush.bf16.msra.mxu2 %v1101_v41 }
  0xd9   :  { %857 = vmatpush.bf16.msra.mxu2 %v1065_v44 }
  0xdd   :  { %858 = vmatpush.bf16.msra.mxu2 %v1029_v47 }
  0xe1   :  { %859 = vmatpush.bf16.msra.mxu2 %v993_v50 }
  0xe4   :  { %860 = vmatmul.bf16.vlgmr.msra.gmra.mxu2 %v277_v26 }
 0x141   :  { %v783_v54 = vpop.f32.mrf.mxu0  ;;  %v796_v55 = vpop.f32.mrf.mxu1 }
 0x142   :  { %v784_v56 = vadd.f32 %v783_v54, %v364_v52  ;;  %v797_v57 = vadd.f32 %v796_v55, %v365_v53 }
 0x144   :  { %867 = vst [vmem:[#allocation13 + $0x10] sm:$0xff] %v784_v56 }
 0x145   :  { %868 = vst [vmem:[#allocation13 + $0x18] sm:$0xff] %v797_v57 }
 0x146   :  { %v757_v60 = vpop.f32.mrf.mxu2  ;;  %v770_v61 = vpop.f32.mrf.mxu3 }
 0x147   :  { %v758_v62 = vadd.f32 %v757_v60, %v362_v58  ;;  %v771_v63 = vadd.f32 %v770_v61, %v363_v59 }
 0x149   :  { %865 = vst [vmem:[#allocation13] sm:$0xff] %v758_v62  ;;  %v785_v0 = vpop.f32.mrf.mxu0  ;;  %v798_v1 = vpop.f32.mrf.mxu1 }
 0x14a   :  { %866 = vst [vmem:[#allocation13 + $0x8] sm:$0xff] %v771_v63 }
 0x14e   :  { %v759_v2 = vpop.f32.mrf.mxu2  ;;  %v772_v3 = vpop.f32.mrf.mxu3 }
 0x151   :  { %v835_v6 = vpop.f32.mrf.mxu0  ;;  %v848_v7 = vpop.f32.mrf.mxu1 }
 0x152   :  { %v836_v8 = vadd.f32 %v835_v6, %v368_v4  ;;  %v849_v9 = vadd.f32 %v848_v7, %v369_v5 }
 0x154   :  { %871 = vst [vmem:[#allocation13 + $0x30] sm:$0xff] %v836_v8 }
 0x155   :  { %872 = vst [vmem:[#allocation13 + $0x38] sm:$0xff] %v849_v9 }
 0x156   :  { %v809_v12 = vpop.f32.mrf.mxu2  ;;  %v822_v13 = vpop.f32.mrf.mxu3 }
 0x157   :  { %v810_v14 = vadd.f32 %v809_v12, %v366_v10  ;;  %v823_v15 = vadd.f32 %v822_v13, %v367_v11 }
 0x159   :  { %869 = vst [vmem:[#allocation13 + $0x20] sm:$0xff] %v810_v14  ;;  %v837_v16 = vpop.f32.mrf.mxu0  ;;  %v850_v17 = vpop.f32.mrf.mxu1 }
 0x15a   :  { %870 = vst [vmem:[#allocation13 + $0x28] sm:$0xff] %v823_v15 }
 0x15e   :  { %v811_v18 = vpop.f32.mrf.mxu2  ;;  %v824_v19 = vpop.f32.mrf.mxu3 }
 0x167   :  { %v861_v21 = vpop.f32.mrf.mxu2 }
 0x168   :  { %v862_v22 = vadd.f32 %v1346_v20, %v861_v21 }
 0x16a   :  { %873 = vst [vmem:[#allocation13 + $0x40] sm:$0xff] %v862_v22 }
 0x16b   :  { %884 = dma.vmem_to_hbm [thread:$0]  %s880_s8, 1152, %s882_s11, [#allocation4]  }
 0x16f   :  { %v863_v23 = vpop.f32.mrf.mxu2 }
 0x170   :  { %1523 = dma.done.wait [#allocation4], 1152  }
 0x171   :  { %1524 = vsyncadd [#allocation4], 4294966144 }
 0x172   :  { %889 = vsyncpa [#allocation3], 1 }
 0x173   :  { %890 = vsyncpa [#allocation6], 1 }
 0x174   :  { %891 = vsyncpa [#allocation9], 1 }
 0x175   :  { %892 = vsyncpa [#allocation12], 1 }
 0x176   :  { %893 = vsyncpa [#allocation4], 1 }

</bundles_post_ra>
